<compile_context>
chip_gen: v5e
topology: v5e:2x2
jax: 0.10.0
libtpu: 0.0.40
codegen_flags: <defaults>
</compile_context>

<pallas_src>
import jax
import jax.numpy as jnp
from jax.experimental import pallas as pl
from jax.experimental.pallas import tpu as pltpu


# ---------------------------------------------------------------------------
# Kernels
# ---------------------------------------------------------------------------
def film_mlp_kernel(cond_ref, w1_ref, b1_ref, w2_ref, b2_ref, gb_ref):
    """Conditioning MLP for the whole batch: (B, Td) -> (B, 2*C)."""
    h = jnp.dot(cond_ref[...], w1_ref[...],
                preferred_element_type=jnp.float32) + b1_ref[...]
    h = h * jax.nn.sigmoid(h)                                   # SiLU
    gb_ref[...] = jnp.dot(h, w2_ref[...],
                          preferred_element_type=jnp.float32) + b2_ref[...]


def film_apply_kernel(gamma_ref, beta_ref, x_ref, o_ref):
    """FiLM affine: o = x * (1 + gamma) + beta.

    x block is (rows_tile, HW_tile) with the spatial axis on the 128 lanes;
    gamma / beta blocks are (rows_tile, 1) and broadcast along the lanes.
    """
    o_ref[...] = (x_ref[...] * (1.0 + gamma_ref[...])
                  + beta_ref[...]).astype(o_ref.dtype)


# ---------------------------------------------------------------------------
# Wrappers
# ---------------------------------------------------------------------------
def _full(shape):
    n = len(shape)
    return pl.BlockSpec(shape, lambda i: (0,) * n)


def _pick_tile(n, unit, max_tile):
    """Largest divisor of n that is a multiple of `unit` and <= max_tile;
    falls back to the full extent (full-dim blocks are always legal)."""
    if n <= max_tile:
        return n
    start = max_tile - (max_tile % unit)
    for t in range(start, unit - 1, -unit):
        if n % t == 0:
            return t
    return n


def _mlp_call(cond, p):
    B, Td = cond.shape
    C2 = p["w1"].shape[1]
    return pl.pallas_call(
        film_mlp_kernel,
        out_shape=jax.ShapeDtypeStruct((B, C2), jnp.float32),
        grid=(1,),
        in_specs=[_full((B, Td)), _full((Td, C2)), _full((1, C2)),
                  _full((C2, C2)), _full((1, C2))],
        out_specs=_full((B, C2)),
        compiler_params=pltpu.CompilerParams(dimension_semantics=("arbitrary",)),
    )(cond, p["w1"], p["b1"], p["w2"], p["b2"])


def _apply_call(x2, gamma2, beta2):
    R, HW = x2.shape                       # R = B*C
    row_tile = _pick_tile(R, 8, 512)
    hw_tile = _pick_tile(HW, 128, 2048)

    x_spec = pl.BlockSpec((row_tile, hw_tile), lambda r, t: (r, t))
    gb_spec = pl.BlockSpec((row_tile, 1), lambda r, t: (r, 0))

    return pl.pallas_call(
        film_apply_kernel,
        out_shape=jax.ShapeDtypeStruct((R, HW), x2.dtype),
        grid=(R // row_tile, HW // hw_tile),
        in_specs=[gb_spec, gb_spec, x_spec],
        out_specs=x_spec,
        compiler_params=pltpu.CompilerParams(
            dimension_semantics=("parallel", "parallel")),
    )(gamma2, beta2, x2)


def film_forward(x, cond, p):
    """Equivalent of FiLM.forward(x, cond). x is NCHW, cond is (B, cond_dim)."""
    B, C, H, W = x.shape
    HW = H * W

    gb = _mlp_call(cond, p)                        # (B, 2C), whole batch
    # chunk(2, dim=1): first half -> gamma (scale), second half -> beta (shift)
    gamma = gb[:, :C].reshape(B * C, 1)            # cheap host-side views
    beta = gb[:, C:].reshape(B * C, 1)

    y = _apply_call(x.reshape(B * C, HW), gamma, beta)
    return y.reshape(B, C, H, W)


def init_params(key, cond_dim, num_features):
    """Deterministic synthetic parameters for net = Linear -> SiLU -> Linear."""
    c2 = 2 * num_features
    k1, k2, k3, k4 = jax.random.split(key, 4)
    return {
        "w1": jax.random.normal(k1, (cond_dim, c2), jnp.float32) * 0.1,
        "b1": jax.random.normal(k2, (1, c2), jnp.float32) * 0.05,
        "w2": jax.random.normal(k3, (c2, c2), jnp.float32) * 0.1,
        "b2": jax.random.normal(k4, (1, c2), jnp.float32) * 0.05,
    }


if __name__ == "__main__":
    B, C, H, W, Td = 2, 4, 16, 16, 32
    key = jax.random.PRNGKey(0)
    kx, kc, kp = jax.random.split(key, 3)

    x = jax.random.normal(kx, (B, C, H, W), jnp.float32)
    cond = jax.random.normal(kc, (B, Td), jnp.float32)
    params = init_params(kp, Td, C)

    out = jax.jit(film_forward)(x, cond, params)
    out = jax.block_until_ready(out)

    # Pure-JAX reference of FiLM.forward (loose tolerance: XLA's default f32
    # matmul precision on TPU differs slightly from the MXU f32 path).
    h = cond @ params["w1"] + params["b1"]
    h = h * jax.nn.sigmoid(h)
    gb = h @ params["w2"] + params["b2"]
    ref = x * (1.0 + gb[:, :C][:, :, None, None]) + gb[:, C:][:, :, None, None]

    assert out.shape == (B, C, H, W)
    assert bool(jnp.all(jnp.isfinite(out)))
    assert bool(jnp.allclose(out, ref, rtol=2e-2, atol=2e-2))
    print("KERNEL_OK")
</pallas_src>

<mosaic_0001>
module attributes {stable_mosaic.version = 11 : i64} {
  func.func @film_mlp_kernel(%arg0: i32, %arg1: memref<2x32xf32, #tpu.memory_space<vmem>>, %arg2: memref<32x8xf32, #tpu.memory_space<vmem>>, %arg3: memref<1x8xf32, #tpu.memory_space<vmem>>, %arg4: memref<8x8xf32, #tpu.memory_space<vmem>>, %arg5: memref<1x8xf32, #tpu.memory_space<vmem>>, %arg6: memref<2x8xf32, #tpu.memory_space<vmem>>) attributes {dimension_semantics = [#tpu.dimension_semantics<arbitrary>], iteration_bounds = array<i64: 1>, scalar_prefetch = 0 : i64, scratch_operands = 0 : i64, tpu.core_type = #tpu.core_type<tc>, window_params = [{pipeline_mode = #tpu.pipeline_mode<synchronous>, transform_indices = @transform_0, window_bounds = array<i64: 2, 32>}, {pipeline_mode = #tpu.pipeline_mode<synchronous>, transform_indices = @transform_1, window_bounds = array<i64: 32, 8>}, {pipeline_mode = #tpu.pipeline_mode<synchronous>, transform_indices = @transform_2, window_bounds = array<i64: 1, 8>}, {pipeline_mode = #tpu.pipeline_mode<synchronous>, transform_indices = @transform_3, window_bounds = array<i64: 8, 8>}, {pipeline_mode = #tpu.pipeline_mode<synchronous>, transform_indices = @transform_4, window_bounds = array<i64: 1, 8>}, {pipeline_mode = #tpu.pipeline_mode<synchronous>, transform_indices = @transform_5, window_bounds = array<i64: 2, 8>}]} {
    %c0 = arith.constant 0 : index
    %c0_0 = arith.constant 0 : index
    %0 = vector.load %arg1[%c0, %c0_0] : memref<2x32xf32, #tpu.memory_space<vmem>>, vector<2x32xf32>
    %c0_1 = arith.constant 0 : index
    %c0_2 = arith.constant 0 : index
    %1 = vector.load %arg2[%c0_1, %c0_2] : memref<32x8xf32, #tpu.memory_space<vmem>>, vector<32x8xf32>
    %cst = arith.constant dense<0.000000e+00> : vector<2x8xf32>
    %2 = tpu.matmul %0, %1, %cst {dimension_numbers = #tpu.dot_dimension_numbers<[1], [0], [0], [1], [0, 0, 1, 1], [], []>} : vector<2x32xf32>, vector<32x8xf32>, vector<2x8xf32> -> vector<2x8xf32>
    %c0_3 = arith.constant 0 : index
    %c0_4 = arith.constant 0 : index
    %3 = vector.load %arg3[%c0_3, %c0_4] : memref<1x8xf32, #tpu.memory_space<vmem>>, vector<1x8xf32>
    %4 = vector.broadcast %3 : vector<1x8xf32> to vector<2x8xf32>
    %5 = arith.addf %2, %4 : vector<2x8xf32>
    %6 = arith.negf %5 : vector<2x8xf32>
    %7 = math.exp %6 : vector<2x8xf32>
    %cst_5 = arith.constant 1.000000e+00 : f32
    %8 = vector.broadcast %cst_5 : f32 to vector<2x8xf32>
    %9 = arith.addf %8, %7 : vector<2x8xf32>
    %10 = arith.divf %8, %9 : vector<2x8xf32>
    %11 = arith.mulf %5, %10 : vector<2x8xf32>
    %c0_6 = arith.constant 0 : index
    %c0_7 = arith.constant 0 : index
    %12 = vector.load %arg4[%c0_6, %c0_7] : memref<8x8xf32, #tpu.memory_space<vmem>>, vector<8x8xf32>
    %cst_8 = arith.constant dense<0.000000e+00> : vector<2x8xf32>
    %13 = tpu.matmul %11, %12, %cst_8 {dimension_numbers = #tpu.dot_dimension_numbers<[1], [0], [0], [1], [0, 0, 1, 1], [], []>} : vector<2x8xf32>, vector<8x8xf32>, vector<2x8xf32> -> vector<2x8xf32>
    %c0_9 = arith.constant 0 : index
    %c0_10 = arith.constant 0 : index
    %14 = vector.load %arg5[%c0_9, %c0_10] : memref<1x8xf32, #tpu.memory_space<vmem>>, vector<1x8xf32>
    %15 = vector.broadcast %14 : vector<1x8xf32> to vector<2x8xf32>
    %16 = arith.addf %13, %15 : vector<2x8xf32>
    %c0_11 = arith.constant 0 : index
    %c0_12 = arith.constant 0 : index
    %17 = vector.load %arg6[%c0_11, %c0_12] : memref<2x8xf32, #tpu.memory_space<vmem>>, vector<2x8xf32>
    tpu.vector_store %arg6[%c0_11, %c0_12], %16 {strides = array<i32>} : memref<2x8xf32, #tpu.memory_space<vmem>>, vector<2x8xf32>,
    return
  }
  func.func @transform_0(%arg0: i32) -> (i32, i32) {
    %c0_i32 = arith.constant 0 : i32
    %c0_i32_0 = arith.constant 0 : i32
    %c0_i32_1 = arith.constant 0 : i32
    return %c0_i32, %c0_i32_0 : i32, i32
  }
  func.func @transform_1(%arg0: i32) -> (i32, i32) {
    %c0_i32 = arith.constant 0 : i32
    %c0_i32_0 = arith.constant 0 : i32
    %c0_i32_1 = arith.constant 0 : i32
    return %c0_i32, %c0_i32_0 : i32, i32
  }
  func.func @transform_2(%arg0: i32) -> (i32, i32) {
    %c0_i32 = arith.constant 0 : i32
    %c0_i32_0 = arith.constant 0 : i32
    %c0_i32_1 = arith.constant 0 : i32
    return %c0_i32, %c0_i32_0 : i32, i32
  }
  func.func @transform_3(%arg0: i32) -> (i32, i32) {
    %c0_i32 = arith.constant 0 : i32
    %c0_i32_0 = arith.constant 0 : i32
    %c0_i32_1 = arith.constant 0 : i32
    return %c0_i32, %c0_i32_0 : i32, i32
  }
  func.func @transform_4(%arg0: i32) -> (i32, i32) {
    %c0_i32 = arith.constant 0 : i32
    %c0_i32_0 = arith.constant 0 : i32
    %c0_i32_1 = arith.constant 0 : i32
    return %c0_i32, %c0_i32_0 : i32, i32
  }
  func.func @transform_5(%arg0: i32) -> (i32, i32) {
    %c0_i32 = arith.constant 0 : i32
    %c0_i32_0 = arith.constant 0 : i32
    %c0_i32_1 = arith.constant 0 : i32
    return %c0_i32, %c0_i32_0 : i32, i32
  }
}

module attributes {stable_mosaic.version = 11 : i64} {
  func.func @film_apply_kernel(%arg0: i32, %arg1: i32, %arg2: memref<8x1xf32, #tpu.memory_space<vmem>>, %arg3: memref<8x1xf32, #tpu.memory_space<vmem>>, %arg4: memref<8x256xf32, #tpu.memory_space<vmem>>, %arg5: memref<8x256xf32, #tpu.memory_space<vmem>>) attributes {dimension_semantics = [#tpu.dimension_semantics<parallel>, #tpu.dimension_semantics<parallel>], iteration_bounds = array<i64: 1, 1>, scalar_prefetch = 0 : i64, scratch_operands = 0 : i64, tpu.core_type = #tpu.core_type<tc>, window_params = [{transform_indices = @transform_0, window_bounds = array<i64: 8, 1>}, {transform_indices = @transform_1, window_bounds = array<i64: 8, 1>}, {transform_indices = @transform_2, window_bounds = array<i64: 8, 256>}, {transform_indices = @transform_3, window_bounds = array<i64: 8, 256>}]} {
    %c0 = arith.constant 0 : index
    %c0_0 = arith.constant 0 : index
    %0 = vector.load %arg4[%c0, %c0_0] : memref<8x256xf32, #tpu.memory_space<vmem>>, vector<8x256xf32>
    %c0_1 = arith.constant 0 : index
    %c0_2 = arith.constant 0 : index
    %1 = vector.load %arg2[%c0_1, %c0_2] : memref<8x1xf32, #tpu.memory_space<vmem>>, vector<8x1xf32>
    %cst = arith.constant 1.000000e+00 : f32
    %2 = vector.broadcast %cst : f32 to vector<8x1xf32>
    %3 = arith.addf %2, %1 : vector<8x1xf32>
    %4 = vector.broadcast %3 : vector<8x1xf32> to vector<8x256xf32>
    %5 = arith.mulf %0, %4 : vector<8x256xf32>
    %c0_3 = arith.constant 0 : index
    %c0_4 = arith.constant 0 : index
    %6 = vector.load %arg3[%c0_3, %c0_4] : memref<8x1xf32, #tpu.memory_space<vmem>>, vector<8x1xf32>
    %7 = vector.broadcast %6 : vector<8x1xf32> to vector<8x256xf32>
    %8 = arith.addf %5, %7 : vector<8x256xf32>
    %c0_5 = arith.constant 0 : index
    %c0_6 = arith.constant 0 : index
    %9 = vector.load %arg5[%c0_5, %c0_6] : memref<8x256xf32, #tpu.memory_space<vmem>>, vector<8x256xf32>
    tpu.vector_store %arg5[%c0_5, %c0_6], %8 {strides = array<i32>} : memref<8x256xf32, #tpu.memory_space<vmem>>, vector<8x256xf32>,
    return
  }
  func.func @transform_0(%arg0: i32, %arg1: i32) -> (i32, i32) {
    %c0_i32 = arith.constant 0 : i32
    %c0_i32_0 = arith.constant 0 : i32
    return %arg0, %c0_i32 : i32, i32
  }
  func.func @transform_1(%arg0: i32, %arg1: i32) -> (i32, i32) {
    %c0_i32 = arith.constant 0 : i32
    %c0_i32_0 = arith.constant 0 : i32
    return %arg0, %c0_i32 : i32, i32
  }
  func.func @transform_2(%arg0: i32, %arg1: i32) -> (i32, i32) {
    %c0_i32 = arith.constant 0 : i32
    return %arg0, %arg1 : i32, i32
  }
  func.func @transform_3(%arg0: i32, %arg1: i32) -> (i32, i32) {
    %c0_i32 = arith.constant 0 : i32
    return %arg0, %arg1 : i32, i32
  }
}

</mosaic_0001>

<bundles_post_ra>
// kernel: film_forward.2
= control target key start
LH: loop header
LB: loop body
LE: loop exit
PB: predicated region body
PF: predicated region fallthrough
CT: control target
= control target key end

     0   :  { %vm29_vm0 = vcmask 261120   ;;  %vm78_vm5 = vcmask 64512   ;;  %vm102_vm6 = vcmask 58368   ;;  %s174_s1 = inlined_call_operand.vmem [shape: f32[32,8], index: 1, kind: input, shape index: {}]   ;;  %s175_s2 = inlined_call_operand.vmem [shape: f32[1,8], index: 2, kind: input, shape index: {}]   ;;  %s176_s0 = inlined_call_operand.vmem [shape: f32[2,32], index: 0, kind: input, shape index: {}]   ;;  %s177_s4 = inlined_call_operand.vmem [shape: f32[1,8], index: 4, kind: input, shape index: {}]   ;;  %s178_s3 = inlined_call_operand.vmem [shape: f32[8,8], index: 3, kind: input, shape index: {}]   ;;  %s179_s5 = inlined_call_operand.vmem [shape: f32[2,8], index: 5, kind: output, shape index: {}]  }
   0x1   :  { %v24_v0 = vld [vmem:[%s174_s1 + $0x18] sm:$0xff]  ;;  %v23_v1 = vld [vmem:[%s174_s1 + $0x10] sm:$0xff]  ;;  %v22_v2 = vld [vmem:[%s174_s1 + $0x8] sm:$0xff] }
   0x2   :  { %45 = vmatpush.msra.mxu0 %v24_v0  ;;  %v21_v3 = vld [vmem:[%s174_s1] sm:$0xff] }
   0x3   :  { %v20_v4 = vld [vmem:[%s176_s0] sm:$0x3] }
   0x4   :  { %46 = vmatpush.msra.mxu0 %v23_v1  ;;  %v111_v5 = vld [vmem:[%s175_s2] ss:$0 sm:$0xff] }
   0x5   :  { %v73_v6 = vld [vmem:[%s178_s3] sm:$0xff] }
   0x6   :  { %47 = vmatpush.msra.mxu0 %v22_v2  ;;  %97 = vmatpush.msra.mxu1 %v73_v6  ;;  %v112_v23 = vld [vmem:[%s177_s4] ss:$0 sm:$0xff] }
   0x8   :  { %48 = vmatpush.msra.mxu0 %v21_v3 }
   0x9   :  { %108 = vmatmul.msk.f32.vlgmr.msra.gmra.mxu0 %vm29_vm0, %v20_v4 }
  0x86   :  { %v50_v7 = vpop.f32.mrf.mxu0 }
  0x87   :  { %v51_v8 = vadd.f32 %v111_v5, %v50_v7 }
  0x89   :  { %v109_v9 = vmul.f32 -1.442695, %v51_v8 }
  0x8b   :  { %113 = vpow2.f32 %v109_v9 }
  0x91   :  { %v114_v10 = vpop.eup %113 }
  0x92   :  { %v56_v11 = vadd.f32 1.0, %v114_v10 }
  0x94   :  { %115 = vrcp.f32 %v56_v11  ;;  %v68_v15 = vand.u32 2147483648, %v56_v11  ;;  %v66_v17 = vand.u32 2147483647, %v56_v11  ;;  %vm62_vm2 = vweird.f32 %v56_v11 }
  0x96   :  { %v69_v19 = vor.u32 1.1754944e-38, %v68_v15  ;;  %vm67_vm4 = vcmp.eq.f32.partialorder %v66_v17, 8.507059e+37 }
  0x9a   :  { %v116_v12 = vpop.eup %115 }
  0x9b   :  { %v58_v13 = vmul.f32 %v116_v12, %v56_v11  ;;  %vm63_vm1 = vweird.f32 %v116_v12 }
  0x9c   :  { %vm64_vm3 = vmor %vm62_vm2, %vm63_vm1 }
  0x9d   :  { %v59_v14 = vsub.f32 1.0, %v58_v13 }
  0x9f   :  { %v60_v16 = vmul.f32 %v116_v12, %v59_v14 }
  0xa1   :  { %v61_v18 = vadd.f32 %v116_v12, %v60_v16 }
  0xa3   :  { %v65_v20 = vsel %vm64_vm3, %v116_v12, %v61_v18 }
  0xa4   :  { %v70_v21 = vsel %vm67_vm4, %v69_v19, %v65_v20 }
  0xa5   :  { %v72_v22 = vmul.f32 %v70_v21, %v51_v8 }
  0xa7   :  { %110 = vmatmul.msk.f32.vlgmr.msra.gmra.mxu1 %vm78_vm5, %v72_v22 }
 0x124   :  { %v99_v24 = vpop.f32.mrf.mxu1 }
 0x125   :  { %v100_v25 = vadd.f32 %v112_v23, %v99_v24 }
 0x127   :  { %103 = vst.msk [vmem:[%s179_s5] sm:$0x3] %vm102_vm6, %v100_v25 }

// kernel: film_forward.3
= control target key start
LH: loop header
LB: loop body
LE: loop exit
PB: predicated region body
PF: predicated region fallthrough
CT: control target
= control target key end

     0   :  { %v41_v0 = vmov 0   ;;  %s80_s0 = inlined_call_operand.vmem [shape: f32[8,1], index: 0, kind: input, shape index: {}]   ;;  %s81_s1 = inlined_call_operand.vmem [shape: f32[8,1], index: 1, kind: input, shape index: {}]   ;;  %s82_s2 = inlined_call_operand.vmem [shape: f32[8,256], index: 2, kind: input, shape index: {}]   ;;  %s83_s3 = inlined_call_operand.vmem [shape: f32[8,256], index: 3, kind: output, shape index: {}]  }
   0x1   :  { %40 = vset.pattern.permute.xlu0 %v41_v0  ;;  %v16_v1 = vld [vmem:[%s80_s0] sm:$0xff]  ;;  %v15_v6 = vld [vmem:[%s82_s2 + $0x8] sm:$0xff] }
   0x2   :  { %v17_v2 = vadd.f32 1.0, %v16_v1  ;;  %v25_v3 = vld [vmem:[%s81_s1] sm:$0xff] }
   0x3   :  { %v14_v5 = vld [vmem:[%s82_s2] sm:$0xff] }
   0x4   :  { %20 = vperm.xlu0 %40, %v17_v2  }
   0xc   :  { %28 = vperm.xlu0 %40, %v25_v3  }
  0x76   :  { %v21_v4 = vpop.permute.xlu0 %20 }
  0x77   :  { %v23_v7 = vmul.f32 %v21_v4, %v14_v5  ;;  %v24_v8 = vmul.f32 %v21_v4, %v15_v6 }
  0x7e   :  { %v29_v9 = vpop.permute.xlu0 %28 }
  0x7f   :  { %v31_v10 = vadd.f32 %v29_v9, %v23_v7  ;;  %v32_v11 = vadd.f32 %v29_v9, %v24_v8 }
  0x81   :  { %33 = vst [vmem:[%s83_s3] sm:$0xff] %v31_v10 }
  0x82   :  { %34 = vst [vmem:[%s83_s3 + $0x8] sm:$0xff] %v32_v11 }

</bundles_post_ra>
